<compile_context>
chip_gen: v7x
topology: tpu7x:2x2x1
jax: 0.10.0
libtpu: 0.0.40
codegen_flags: <defaults>
</compile_context>

<pallas_src>
import functools
import math

import numpy as np
import jax
import jax.numpy as jnp
from jax import lax
from jax.experimental import pallas as pl
from jax.experimental.pallas import tpu as pltpu

_NEG_INF = -1e30  # additive mask value; representable in bf16, exp() underflows to exactly 0


def _lin_relu_kernel(x_ref, w_ref, b_ref, o_ref):
    # h = relu(x @ W + b); W / b are zero-padded on the output-channel axis to 128 lanes,
    # so padded lanes stay exactly 0 through the whole network.
    h = jnp.dot(x_ref[...], w_ref[...], preferred_element_type=jnp.float32) + b_ref[...]
    o_ref[...] = jnp.maximum(h, 0.0)


def _agnn_prop_kernel(beta_ref, h_dst_ref, h_src_ref, bias_ref, o_ref,
                      hn_dst_ref, m_ref, l_ref, acc_ref, *, final_normalize):
    j = pl.program_id(1)

    @pl.when(j == 0)
    def _():
        # Row-normalize the resident dst block once per i, fold beta in, keep bf16 for the MXU.
        hd = h_dst_ref[...]
        inv = lax.rsqrt(jnp.maximum(jnp.sum(hd * hd, axis=-1, keepdims=True), 1e-24))
        hn_dst_ref[...] = (hd * inv * beta_ref[0, 0]).astype(jnp.bfloat16)
        m_ref[...] = jnp.full(m_ref.shape, -jnp.inf, jnp.float32)
        l_ref[...] = jnp.zeros(l_ref.shape, jnp.float32)
        acc_ref[...] = jnp.zeros(acc_ref.shape, jnp.float32)

    # Normalize the streamed src block (recompute instead of streaming hn: saves HBM traffic).
    hs = h_src_ref[...]
    inv_s = lax.rsqrt(jnp.maximum(jnp.sum(hs * hs, axis=-1, keepdims=True), 1e-24))
    hn_s = (hs * inv_s).astype(jnp.bfloat16)

    # scores: beta * <hn_i, hn_j>, contracting the lane-resident channel axis of both operands
    # (no transpose materialized), f32 accumulation.
    s = lax.dot_general(hn_dst_ref[...], hn_s,
                        dimension_numbers=(((1,), (1,)), ((), ())),
                        preferred_element_type=jnp.float32)
    s = s + bias_ref[...].astype(jnp.float32)  # additive adjacency mask (0 / -1e30)

    # online softmax update
    m_prev = m_ref[...]
    m_new = jnp.maximum(m_prev, jnp.max(s, axis=-1, keepdims=True))
    alpha = jnp.exp(m_prev - m_new)
    p = jnp.exp(s - m_new)
    l_ref[...] = alpha * l_ref[...] + jnp.sum(p, axis=-1, keepdims=True)
    acc_ref[...] = alpha * acc_ref[...] + lax.dot_general(
        p.astype(jnp.bfloat16), hs.astype(jnp.bfloat16),
        dimension_numbers=(((1,), (0,)), ((), ())),
        preferred_element_type=jnp.float32)
    m_ref[...] = m_new

    @pl.when(j == pl.num_programs(1) - 1)
    def _():
        out = acc_ref[...] * pl.reciprocal(l_ref[...], approx=True)
        if final_normalize:
            # F.normalize(x, eps=5e-4): x / max(||x||, 5e-4) == x * rsqrt(max(||x||^2, 2.5e-7))
            inv_n = lax.rsqrt(jnp.maximum(jnp.sum(out * out, axis=-1, keepdims=True),
                                          0.0005 ** 2))
            out = out * inv_n
        o_ref[...] = out.astype(o_ref.dtype)


def encoder_agnn(x, w, b, adj, beta1, beta2, *, blk_dst=128, blk_src=128):
    """x: (N, C_in) f32; w: (C_in, C_out) (torch weight already transposed); b: (1, C_out);
    adj: (N, N) dense mask, adj[i, j] = 1 iff edge j -> i (self-loops included);
    beta1/beta2: (1, 1) f32 AGNN temperatures."""
    n, c_in = x.shape
    c_out = w.shape[1]
    make_params = functools.partial(pltpu.CompilerParams,
                                    vmem_limit_bytes=32 * 1024 * 1024)

    # --- pad channels to the 128-wide lane axis and nodes to the block grid ---
    cp = 128 * max(1, -(-c_out // 128))
    lcm = blk_dst * blk_src // math.gcd(blk_dst, blk_src)
    npad = -(-n // lcm) * lcm

    w_p = jnp.zeros((c_in, cp), jnp.float32).at[:, :c_out].set(w.astype(jnp.float32))
    b_p = jnp.zeros((1, cp), jnp.float32).at[:, :c_out].set(
        jnp.reshape(b, (1, c_out)).astype(jnp.float32))
    x_p = jnp.zeros((npad, c_in), jnp.float32).at[:n, :].set(x.astype(jnp.float32))

    # Precompute the additive adjacency bias once (0 on edges / self-loops, -1e30 elsewhere),
    # streamed as bf16 to halve the dominant N x N HBM traffic.  Padded rows get a self-loop
    # so their (discarded) softmax rows stay well defined.
    bias_f32 = jnp.where(adj > 0, 0.0, _NEG_INF).astype(jnp.float32)
    bias_p = jnp.full((npad, npad), _NEG_INF, jnp.float32).at[:n, :n].set(bias_f32)
    diag = jnp.arange(npad)
    bias_p = bias_p.at[diag, diag].set(0.0).astype(jnp.bfloat16)

    # --- pass 1: lin1 + ReLU ---
    h = pl.pallas_call(
        _lin_relu_kernel,
        out_shape=jax.ShapeDtypeStruct((npad, cp), jnp.float32),
        grid_spec=pltpu.PrefetchScalarGridSpec(
            num_scalar_prefetch=0,
            grid=(npad // blk_dst,),
            in_specs=[pl.BlockSpec((blk_dst, c_in), lambda i: (i, 0)),
                      pl.BlockSpec((c_in, cp), lambda i: (0, 0)),
                      pl.BlockSpec((1, cp), lambda i: (0, 0))],
            out_specs=pl.BlockSpec((blk_dst, cp), lambda i: (i, 0)),
        ),
        compiler_params=make_params(dimension_semantics=("parallel",)),
    )(x_p, w_p, b_p)

    # --- passes 2 & 3: AGNN propagations (flash-style online softmax over src blocks) ---
    def prop(h_in, beta, final_normalize):
        kernel = functools.partial(_agnn_prop_kernel, final_normalize=final_normalize)
        return pl.pallas_call(
            kernel,
            out_shape=jax.ShapeDtypeStruct((npad, cp), jnp.float32),
            grid_spec=pltpu.PrefetchScalarGridSpec(
                num_scalar_prefetch=0,
                grid=(npad // blk_dst, npad // blk_src),
                in_specs=[
                    pl.BlockSpec(memory_space=pltpu.MemorySpace.SMEM),      # beta (1,1) scalar
                    pl.BlockSpec((blk_dst, cp), lambda i, j: (i, 0)),       # h, dst rows
                    pl.BlockSpec((blk_src, cp), lambda i, j: (j, 0)),       # h, src rows
                    pl.BlockSpec((blk_dst, blk_src), lambda i, j: (i, j)),  # bf16 adj bias tile
                ],
                out_specs=pl.BlockSpec((blk_dst, cp), lambda i, j: (i, 0)),
                scratch_shapes=[
                    pltpu.VMEM((blk_dst, cp), jnp.bfloat16),  # beta * normalized dst rows
                    pltpu.VMEM((blk_dst, 1), jnp.float32),    # running max m
                    pltpu.VMEM((blk_dst, 1), jnp.float32),    # running denom l
                    pltpu.VMEM((blk_dst, cp), jnp.float32),   # running numerator acc
                ],
            ),
            compiler_params=make_params(
                dimension_semantics=("parallel", "arbitrary")),
        )(beta, h_in, h_in, bias_p)

    h = prop(h, beta1, False)
    h = prop(h, beta2, True)  # final F.normalize fused into this pass's epilogue
    return h[:n, :c_out]


def reference(x, w, b, adj, beta1, beta2):
    hp = jax.lax.Precision.HIGHEST
    h = jnp.maximum(jnp.dot(x, w, precision=hp) + b, 0.0)

    def prop(h, beta):
        nrm = jnp.sqrt(jnp.sum(h * h, axis=-1, keepdims=True))
        hn = h / jnp.maximum(nrm, 1e-12)
        s = beta * jnp.dot(hn, hn.T, precision=hp)
        s = jnp.where(adj > 0, s, -1e30)
        e = jnp.exp(s - jnp.max(s, axis=-1, keepdims=True)) * adj
        a = e / jnp.sum(e, axis=-1, keepdims=True)
        return jnp.dot(a, h, precision=hp)

    h = prop(h, beta1)
    h = prop(h, beta2)
    nrm = jnp.sqrt(jnp.sum(h * h, axis=-1, keepdims=True))
    return h / jnp.maximum(nrm, 0.0005)


def build_adjacency(edge_index, num_nodes):
    # AGNNConv(add_self_loops=True): remove existing self-loops, then add all self-loops.
    src = np.asarray(edge_index[0])
    dst = np.asarray(edge_index[1])
    adj = np.zeros((num_nodes, num_nodes), dtype=np.float32)
    adj[dst, src] = 1.0
    np.fill_diagonal(adj, 1.0)
    return adj


if __name__ == "__main__":
    N = 256          # number of nodes (gives a real 2x2 block grid with 128-row tiles)
    C_IN = 32        # in_channels ("hidden")
    C_OUT = 16       # out_channels (module default)

    key = jax.random.PRNGKey(0)
    kx, kw, kb = jax.random.split(key, 3)

    # Node features
    x = jax.random.normal(kx, (N, C_IN), dtype=jnp.float32)

    # Deterministic ring graph, both directions: edge_index shape (2, 2N)
    src = np.concatenate([np.arange(N), (np.arange(N) + 1) % N])
    dst = np.concatenate([(np.arange(N) + 1) % N, np.arange(N)])
    edge_index = np.stack([src, dst], axis=0)
    adj = jnp.asarray(build_adjacency(edge_index, N))

    # Linear(in_channels, out_channels) init ~ U(-1/sqrt(in), 1/sqrt(in)); pass W transposed.
    bound = 1.0 / np.sqrt(C_IN)
    w_t = jax.random.uniform(kw, (C_IN, C_OUT), jnp.float32, -bound, bound)
    b_lin = jax.random.uniform(kb, (1, C_OUT), jnp.float32, -bound, bound)

    # AGNNConv(requires_grad=True) -> beta initialized to 1.0
    beta1 = jnp.ones((1, 1), jnp.float32)
    beta2 = jnp.ones((1, 1), jnp.float32)

    out = encoder_agnn(x, w_t, b_lin, adj, beta1, beta2)
    out = jax.block_until_ready(out)

    ref = reference(x, w_t, b_lin, adj, 1.0, 1.0)
    assert out.shape == (N, C_OUT)
    # Kernel uses bf16 MXU operands (f32 accumulation) + approx reciprocal, so compare with a
    # tolerance that covers bf16 rounding; the f32 reference uses Precision.HIGHEST.
    np.testing.assert_allclose(np.asarray(out), np.asarray(ref), rtol=5e-2, atol=5e-2)

    print("KERNEL_OK")
</pallas_src>

<mosaic_0001>
module attributes {stable_mosaic.version = 11 : i64} {
  func.func @_lin_relu_kernel(%arg0: i32, %arg1: memref<128x32xf32, #tpu.memory_space<vmem>>, %arg2: memref<32x128xf32, #tpu.memory_space<vmem>>, %arg3: memref<1x128xf32, #tpu.memory_space<vmem>>, %arg4: memref<128x128xf32, #tpu.memory_space<vmem>>) attributes {dimension_semantics = [#tpu.dimension_semantics<parallel>], iteration_bounds = array<i64: 2>, scalar_prefetch = 0 : i64, scratch_operands = 0 : i64, tpu.core_type = #tpu.core_type<tc>, window_params = [{transform_indices = @transform_0, window_bounds = array<i64: 128, 32>}, {pipeline_mode = #tpu.pipeline_mode<synchronous>, transform_indices = @transform_1, window_bounds = array<i64: 32, 128>}, {pipeline_mode = #tpu.pipeline_mode<synchronous>, transform_indices = @transform_2, window_bounds = array<i64: 1, 128>}, {transform_indices = @transform_3, window_bounds = array<i64: 128, 128>}]} {
    %c0 = arith.constant 0 : index
    %c0_0 = arith.constant 0 : index
    %0 = vector.load %arg1[%c0, %c0_0] : memref<128x32xf32, #tpu.memory_space<vmem>>, vector<128x32xf32>
    %c0_1 = arith.constant 0 : index
    %c0_2 = arith.constant 0 : index
    %1 = vector.load %arg2[%c0_1, %c0_2] : memref<32x128xf32, #tpu.memory_space<vmem>>, vector<32x128xf32>
    %cst = arith.constant dense<0.000000e+00> : vector<128x128xf32>
    %2 = tpu.matmul %0, %1, %cst {dimension_numbers = #tpu.dot_dimension_numbers<[1], [0], [0], [1], [0, 0, 1, 1], [], []>} : vector<128x32xf32>, vector<32x128xf32>, vector<128x128xf32> -> vector<128x128xf32>
    %c0_3 = arith.constant 0 : index
    %c0_4 = arith.constant 0 : index
    %3 = vector.load %arg3[%c0_3, %c0_4] : memref<1x128xf32, #tpu.memory_space<vmem>>, vector<1x128xf32>
    %4 = vector.broadcast %3 : vector<1x128xf32> to vector<128x128xf32>
    %5 = arith.addf %2, %4 : vector<128x128xf32>
    %cst_5 = arith.constant 0.000000e+00 : f32
    %6 = vector.broadcast %cst_5 : f32 to vector<128x128xf32>
    %7 = arith.maximumf %5, %6 : vector<128x128xf32>
    %c0_6 = arith.constant 0 : index
    %c0_7 = arith.constant 0 : index
    %8 = vector.load %arg4[%c0_6, %c0_7] : memref<128x128xf32, #tpu.memory_space<vmem>>, vector<128x128xf32>
    tpu.vector_store %arg4[%c0_6, %c0_7], %7 {strides = array<i32>} : memref<128x128xf32, #tpu.memory_space<vmem>>, vector<128x128xf32>,
    return
  }
  func.func @transform_0(%arg0: i32) -> (i32, i32) {
    %c0_i32 = arith.constant 0 : i32
    %c0_i32_0 = arith.constant 0 : i32
    return %arg0, %c0_i32 : i32, i32
  }
  func.func @transform_1(%arg0: i32) -> (i32, i32) {
    %c0_i32 = arith.constant 0 : i32
    %c0_i32_0 = arith.constant 0 : i32
    %c0_i32_1 = arith.constant 0 : i32
    return %c0_i32, %c0_i32_0 : i32, i32
  }
  func.func @transform_2(%arg0: i32) -> (i32, i32) {
    %c0_i32 = arith.constant 0 : i32
    %c0_i32_0 = arith.constant 0 : i32
    %c0_i32_1 = arith.constant 0 : i32
    return %c0_i32, %c0_i32_0 : i32, i32
  }
  func.func @transform_3(%arg0: i32) -> (i32, i32) {
    %c0_i32 = arith.constant 0 : i32
    %c0_i32_0 = arith.constant 0 : i32
    return %arg0, %c0_i32 : i32, i32
  }
}

</mosaic_0001>

<bundles_post_ra>
// kernel: tpu_custom_call.1
= control target key start
LH: loop header
LB: loop body
LE: loop exit
PB: predicated region body
PF: predicated region fallthrough
CT: control target
= control target key end

     0   :  { %8 = vsyncpa [#allocation3], 0  ;;  %s897_s0 = inlined_call_operand.vmem [shape: f32[256,32], index: 0, kind: input, shape index: {}]   ;;  %s898_s1 = inlined_call_operand.vmem [shape: f32[32,128], index: 1, kind: input, shape index: {}]   ;;  %s899_s2 = inlined_call_operand.vmem [shape: f32[1,128], index: 2, kind: input, shape index: {}]   ;;  %s900_s3 = inlined_call_operand.hbm [shape: f32[256,128], index: 3, kind: output, shape index: {}]  }
   0x1   :  { %10 = vsyncpa [#allocation3 + $0x1], 0  ;;  %s723_s12 = smov 0   ;;  %s725_s13 = smov 0  }
   0x2   :  { %s727_s14 = smov 0   ;;  %s729_s15 = smov 0  }
   0x3 LB: > { %s744_s16 = sadd.s32 4294967295, %s698_s15   ;;  %s501_s17 = sadd.s32 4294967294, %s698_s15   ;;  %s698_s15 = sphi %s729_s15, %s906_s15   ;;  %s694_s14 = sphi %s727_s14, %s905_s14   ;;  %s690_s13 = sphi %s725_s13, %s904_s13   ;;  %s686_s12 = sphi %s723_s12, %s903_s12  }
   0x4   : > { %s748_s18 = sadd.s32 1, %s698_s15   ;;  %s91_s19 = sadd.s32 1, %s694_s14 }
   0x5   : > { %s88_s20 = ssub.s32 %s698_s15, %s748_s18  ;;  %p101_p0 = scmp.ne.s32.totalorder %s694_s14, %s690_s13 }
   0x6   : > { %p89_p1 = scmp.eq.s32.totalorder %s88_s20, 0  ;;  %p102_p2 = scmp.eq.s32.totalorder %s744_s16, 1 }
   0x7   : > { %p107_p3 = scmp.ne.s32.totalorder %s690_s13, %s686_s12  ;;  %p108_p4 = scmp.eq.s32.totalorder %s501_s17, 1 }
   0x8   : > { %s759_s21 = scalar_select %p89_p1, %s694_s14, %s91_s19  }
   0x9   : > { %p761_p5 = por %p102_p2, %p101_p0  ;;  %p765_p6 = por %p108_p4, %p107_p3 }
   0xa   : > { %p504_p7 = scmp.ge.s32.totalorder %s698_s15, 1  ;;  %p141_p8 = scmp.lt.s32.totalorder %s698_s15, 3 }
   0xc   : > { %p142_p9 = pnand %p504_p7, %p141_p8 }
   0xd   : > { %v188_v0 = vld [vmem:[%s898_s1] sm:$0xff] (!%p142_p9)  ;;  %v189_v1 = vld [vmem:[%s898_s1 + $0x8] sm:$0xff] (!%p142_p9)  ;;  %v190_v2 = vld [vmem:[%s898_s1 + $0x10] sm:$0xff] (!%p142_p9)  ;;  %s506_s30 = sshll.u32 (!%p142_p9), %s744_s16, 4  ;;  %vm199_vm0 = vcmask (!%p142_p9), 261120   ;;  %s162_s10 = sand.u32 (!%p142_p9), 1, %s690_s13  }
   0xe   : > { %145 = sbr.rel (%p142_p9) target bundleno = 271 (0x10f), region = 32  ;;  %v583_v3 = vpack.c.bf16 (!%p142_p9), %v189_v1, %v188_v0  ;;  %v191_v4 = vld [vmem:[%s898_s1 + $0x18] sm:$0xff] (!%p142_p9)  ;;  %p166_p10 = scmp.lt.s32.totalorder (!%p142_p9), %s506_s30, 31  ;;  %v508_v22 = vld [vmem:[%s899_s2] ss:$0 sm:$0xff] (!%p142_p9) }
   0xf   : > { %v587_v5 = vpack.c.bf16 (!%p142_p9), %v191_v4, %v190_v2  ;;  %s505_s19 = sshll.u32 (!%p142_p9), %s162_s10, 7  ;;  %s530_s24 = sshll.u32 (!%p142_p9), %s744_s16, 11 }
  0x10   : > { %584 = vmatprep.subr.bf16.mxu0 (!%p142_p9), %v583_v3  ;;  %591 = vmatprep.subr.bf16.mxu1 (!%p142_p9), %v583_v3  ;;  %s827_s20 = scalar_lea.vmem (!%p142_p9), [#allocation2], %s505_s19  ;;  %s846_s27 = scalar_lea.hbm (!%p142_p9), %s900_s3, %s530_s24 }
  0x11   : > { %586 = vmatpush3.bf16.msra.mxu0 (!%p142_p9), %v583_v3  ;;  %593 = vmatpush3.bf16.msra.mxu1 (!%p142_p9), %v583_v3  ;;  %s439_s25 = sshll.u32 (!%p142_p9), %s827_s20, 4  ;;  %s856_s28 = scalar_lea.sflag (!%p142_p9), [#allocation3], %s162_s10  ;;  %s848_s25 = int_to_ptr.vmem [resolvable:$true] %s439_s25 }
  0x12   : > { %588 = vmatprep.subr.bf16.mxu0 (!%p142_p9), %v587_v5  ;;  %592 = vmatprep.subr.bf16.mxu1 (!%p142_p9), %v587_v5  ;;  %s636_s29 = scalar_lea.vmem (!%p142_p9), %s848_s25, 2048 }
  0x13   : > { %p637_p11 = scmp.ne.s32.totalorder (!%p142_p9), %s848_s25, %s636_s29 }
  0x15   : > { %s908_s30 = smov (!%p166_p10, %s506_s30), 31  ;;  %590 = vmatpush3.bf16.msra.mxu0 %v587_v5  ;;  %594 = vmatpush3.bf16.msra.mxu1 %v587_v5  ;;  %p638_p12 = pnand %p637_p11, %p761_p5 }
  0x16   : > { %s507_s6 = sshll.u32 %s908_s30, 3  ;;  %s700_s30 = smov [#allocation2]  }
  0x17   : > { %s787_s9 = scalar_lea.vmem %s897_s0, %s507_s6  ;;  %p639_p13 = pneg %p638_p12 }
  0x18   : > { %v172_v6 = vld [vmem:[%s787_s9] sm:$0xff]  ;;  %v173_v8 = vld [vmem:[%s787_s9 + $0x8] sm:$0xff]  ;;  %v174_v10 = vld [vmem:[%s787_s9 + $0x10] sm:$0xff]  ;;  %s640_s4 = sshll.u32 %s700_s30, 4  ;;  %s641_s4 = int_to_ptr.vmem [resolvable:$false] %s640_s4 }
  0x19   : > { %v180_v7 = vld [vmem:[%s787_s9 + $0x40] sm:$0xff]  ;;  %v181_v9 = vld [vmem:[%s787_s9 + $0x48] sm:$0xff]  ;;  %559 = vmatprep.mubr.msk.f32.mxu0 %vm199_vm0, %v172_v6  ;;  %v182_v11 = vld [vmem:[%s787_s9 + $0x50] sm:$0xff]  ;;  %s642_s5 = scalar_lea.vmem %s641_s4, 4096  ;;  %p643_p0 = scmp.lt.s32.totalorder %s848_s25, %s641_s4 }
  0x1a   : > { %571 = vmatprep.mubr.msk.f32.mxu1 %vm199_vm0, %v180_v7  ;;  %560 = vmatmul.mubr.msk.f32.vlgmr.msra.gmra.mrb[0].mxu0 %vm199_vm0, %v173_v8  ;;  %v175_v12 = vld [vmem:[%s787_s9 + $0x18] sm:$0xff]  ;;  %v176_v14 = vld [vmem:[%s787_s9 + $0x20] sm:$0xff]  ;;  %v177_v16 = vld [vmem:[%s787_s9 + $0x28] sm:$0xff]  ;;  %p644_p1 = scmp.lt.s32.totalorder %s642_s5, %s636_s29 }
  0x1b   : > { %572 = vmatmul.mubr.msk.f32.vlgmr.msra.gmra.mrb[0].mxu1 %vm199_vm0, %v181_v9  ;;  %562 = vmatprep.mubr.msk.f32.mxu0 %vm199_vm0, %v174_v10  ;;  %v183_v13 = vld [vmem:[%s787_s9 + $0x58] sm:$0xff]  ;;  %v184_v15 = vld [vmem:[%s787_s9 + $0x60] sm:$0xff]  ;;  %v185_v17 = vld [vmem:[%s787_s9 + $0x68] sm:$0xff] }
  0x1c   : > { %574 = vmatprep.mubr.msk.f32.mxu1 %vm199_vm0, %v182_v11  ;;  %v178_v18 = vld [vmem:[%s787_s9 + $0x30] sm:$0xff]  ;;  %v179_v20 = vld [vmem:[%s787_s9 + $0x38] sm:$0xff]  ;;  %p645_p2 = por %p644_p1, %p643_p0 }
  0x1d   : > { %v186_v19 = vld [vmem:[%s787_s9 + $0x70] sm:$0xff]  ;;  %v187_v21 = vld [vmem:[%s787_s9 + $0x78] sm:$0xff] }
  0x1e   : > { %563 = vmatmul.mubr.msk.f32.gmra.mrb[2].mxu0 %vm199_vm0, %v175_v12  ;;  %p646_p3 = pnand %p645_p2, %p639_p13 }
  0x1f   : > { %575 = vmatmul.mubr.msk.f32.gmra.mrb[2].mxu1 %vm199_vm0, %v183_v13  ;;  %565 = vmatprep.mubr.msk.f32.mxu0 %vm199_vm0, %v176_v14 }
  0x20   : > { %577 = vmatprep.mubr.msk.f32.mxu1 %vm199_vm0, %v184_v15 }
  0x22   : > { %566 = vmatmul.mubr.msk.f32.gmra.mrb[4].mxu0 %vm199_vm0, %v177_v16 }
  0x23   : > { %578 = vmatmul.mubr.msk.f32.gmra.mrb[4].mxu1 %vm199_vm0, %v185_v17  ;;  %568 = vmatprep.mubr.msk.f32.mxu0 %vm199_vm0, %v178_v18 }
  0x24   : > { %580 = vmatprep.mubr.msk.f32.mxu1 %vm199_vm0, %v186_v19 }
  0x26   : > { %569 = vmatmul.mubr.msk.f32.gmra.mrb[6].mxu0 %vm199_vm0, %v179_v20 }
  0x27   : > { %581 = vmatmul.mubr.msk.f32.gmra.mrb[6].mxu1 %vm199_vm0, %v187_v21 }
  0xed   : > { %v561_v23 = vpop.f32.mrb[0].mxu0 }
  0xee   : > { %v573_v24 = vpop.f32.mrb[0].mxu1  ;;  %v320_v25 = vadd.f32 %v561_v23, %v508_v22  ;;  %v314_v27 = vpop.f32.mrb[1].mxu0 }
  0xef   : > { %v360_v26 = vadd.f32 %v573_v24, %v508_v22  ;;  %v354_v28 = vpop.f32.mrb[1].mxu1  ;;  %v315_v29 = vadd.f32 %v508_v22, %v314_v27 }
  0xf0   : > { %v355_v30 = vadd.f32 %v508_v22, %v354_v28  ;;  %v394_v31 = vmax.f32 %v320_v25, 0.0 }
  0xf1   : > { %v402_v32 = vmax.f32 %v360_v26, 0.0  ;;  %v393_v33 = vmax.f32 %v315_v29, 0.0  ;;  %v564_v35 = vpop.f32.mrb[2].mxu0 }
  0xf2   : > { %v401_v34 = vmax.f32 %v355_v30, 0.0  ;;  %v576_v36 = vpop.f32.mrb[2].mxu1  ;;  %410 = vst [vmem:[%s827_s20 + $0x8] sm:$0xff] %v394_v31  ;;  %v330_v37 = vadd.f32 %v564_v35, %v508_v22  ;;  %v324_v39 = vpop.f32.mrb[3].mxu0 }
  0xf3   : > { %418 = vst [vmem:[%s827_s20 + $0x48] sm:$0xff] %v402_v32  ;;  %v370_v38 = vadd.f32 %v576_v36, %v508_v22  ;;  %v364_v40 = vpop.f32.mrb[3].mxu1  ;;  %409 = vst [vmem:[%s827_s20] sm:$0xff] %v393_v33  ;;  %v325_v41 = vadd.f32 %v508_v22, %v324_v39 }
  0xf4   : > { %417 = vst [vmem:[%s827_s20 + $0x40] sm:$0xff] %v401_v34  ;;  %v365_v42 = vadd.f32 %v508_v22, %v364_v40  ;;  %v396_v43 = vmax.f32 %v330_v37, 0.0 }
  0xf5   : > { %v404_v44 = vmax.f32 %v370_v38, 0.0  ;;  %v395_v45 = vmax.f32 %v325_v41, 0.0  ;;  %v567_v47 = vpop.f32.mrb[4].mxu0 }
  0xf6   : > { %v403_v46 = vmax.f32 %v365_v42, 0.0  ;;  %v579_v48 = vpop.f32.mrb[4].mxu1  ;;  %412 = vst [vmem:[%s827_s20 + $0x18] sm:$0xff] %v396_v43  ;;  %v340_v49 = vadd.f32 %v567_v47, %v508_v22  ;;  %v334_v51 = vpop.f32.mrb[5].mxu0 }
  0xf7   : > { %420 = vst [vmem:[%s827_s20 + $0x58] sm:$0xff] %v404_v44  ;;  %v380_v50 = vadd.f32 %v579_v48, %v508_v22  ;;  %v374_v52 = vpop.f32.mrb[5].mxu1  ;;  %411 = vst [vmem:[%s827_s20 + $0x10] sm:$0xff] %v395_v45  ;;  %v335_v53 = vadd.f32 %v508_v22, %v334_v51 }
  0xf8   : > { %419 = vst [vmem:[%s827_s20 + $0x50] sm:$0xff] %v403_v46  ;;  %v375_v54 = vadd.f32 %v508_v22, %v374_v52  ;;  %v398_v55 = vmax.f32 %v340_v49, 0.0 }
  0xf9   : > { %v406_v56 = vmax.f32 %v380_v50, 0.0  ;;  %v397_v57 = vmax.f32 %v335_v53, 0.0  ;;  %v570_v59 = vpop.f32.mrb[6].mxu0 }
  0xfa   : > { %v405_v58 = vmax.f32 %v375_v54, 0.0  ;;  %v582_v60 = vpop.f32.mrb[6].mxu1  ;;  %414 = vst [vmem:[%s827_s20 + $0x28] sm:$0xff] %v398_v55  ;;  %v350_v61 = vadd.f32 %v570_v59, %v508_v22  ;;  %v344_v63 = vpop.f32.mrb[7].mxu0 }
  0xfb   : > { %422 = vst [vmem:[%s827_s20 + $0x68] sm:$0xff] %v406_v56  ;;  %v390_v62 = vadd.f32 %v582_v60, %v508_v22  ;;  %v384_v0 = vpop.f32.mrb[7].mxu1  ;;  %413 = vst [vmem:[%s827_s20 + $0x20] sm:$0xff] %v397_v57  ;;  %v345_v1 = vadd.f32 %v508_v22, %v344_v63 }
  0xfc   : > { %421 = vst [vmem:[%s827_s20 + $0x60] sm:$0xff] %v405_v58  ;;  %v385_v2 = vadd.f32 %v508_v22, %v384_v0  ;;  %v400_v3 = vmax.f32 %v350_v61, 0.0 }
  0xfd   : > { %v408_v4 = vmax.f32 %v390_v62, 0.0  ;;  %v399_v5 = vmax.f32 %v345_v1, 0.0 }
  0xfe   : > { %v407_v6 = vmax.f32 %v385_v2, 0.0  ;;  %416 = vst [vmem:[%s827_s20 + $0x38] sm:$0xff] %v400_v3 }
  0xff   : > { %424 = vst [vmem:[%s827_s20 + $0x78] sm:$0xff] %v408_v4  ;;  %415 = vst [vmem:[%s827_s20 + $0x30] sm:$0xff] %v399_v5 }
 0x100   : > { %423 = vst [vmem:[%s827_s20 + $0x70] sm:$0xff] %v407_v6 }
 0x101   : > { %649 = shalt.err (!%p646_p3)
}
 0x102   : > { %s650_s6 = scalar_lea.hbm %s846_s27, 2048  ;;  %s654_s9 = scalar_lea.hbm %s900_s3, 4096 }
 0x103   : > { %p651_p4 = scmp.ne.s32.totalorder %s846_s27, %s650_s6  ;;  %p655_p9 = scmp.lt.u32.totalorder %s846_s27, %s900_s3 }
 0x104   : > { %p656_p10 = scmp.lt.u32.totalorder %s654_s9, %s650_s6  ;;  %p658_p12 = scmp.lt.u32.totalorder %s650_s6, %s846_s27 }
 0x105   : > { %p652_p7 = pnand %p651_p4, %p761_p5 }
 0x106   : > { %p657_p11 = por %p656_p10, %p655_p9 }
 0x107   : > { %p653_p8 = pneg %p652_p7 }
 0x108   : > { %p659_p13 = por %p658_p12, %p657_p11 }
 0x10a   : > { %p660_p0 = pnand %p659_p13, %p653_p8 }
 0x10c   : > { %663 = shalt.err (!%p660_p0)
}
 0x10d   : > { %s701_s17 = smov 128   ;;  %s702_s19 = smov 8  }
 0x10e   : > { %595 = dma.vmem_to_hbm [thread:$0]  (%p761_p5), %s848_s25, 2048, %s846_s27, %s856_s28, %s701_s17, %s701_s17, %s702_s19  }
 0x10f PF: > { %p601_p1 = scmp.ge.s32.totalorder %s698_s15, 2  ;;  %s454_s20 = sand.u32 1, %s686_s12  }
 0x110   : > { %s455_s24 = scalar_lea.sflag [#allocation3], %s454_s20 }
 0x111   : > { %p598_p2 = pnand %p601_p1, %p765_p6 }
 0x113   : > { %681 = dma.done.wait (!%p598_p2), %s455_s24, 2048  }
 0x114   : > { %683 = vsyncadd (!%p598_p2), %s455_s24, 4294965248  ;;  %p13_p3 = scmp.ge.s32.totalorder %s748_s18, 4   ;;  %s903_s12 = smov %s690_s13 }
 0x115   : > { %s904_s13 = smov %s694_s14  ;;  %s905_s14 = smov %s759_s21 }
 0x116   : > { %s906_s15 = smov %s748_s18  ;;  %15 = sbr.rel (!%p13_p3) target bundleno = 3 (0x3), region = 67 }
 0x11d   :  { %460 = vsyncpa [#allocation3], 1 }
 0x11e   :  { %462 = vsyncpa [#allocation3 + $0x1], 1 }

</bundles_post_ra>
